<compile_context>
chip_gen: v7x
topology: tpu7x:2x2x1
jax: 0.10.0
libtpu: 0.0.40
codegen_flags: <defaults>
</compile_context>

<pallas_src>
import functools

import jax
import jax.numpy as jnp
from jax.experimental import pallas as pl
from jax.experimental.pallas import tpu as pltpu


def _round_up(a: int, b: int) -> int:
    return ((a + b - 1) // b) * b


def _cdiv(a: int, b: int) -> int:
    return (a + b - 1) // b


def _choose_tm(m: int) -> int:
    """Row-tile size: multiple of 8, 128..512, preferring a deep/even grid."""
    if m <= 128:
        return _round_up(max(m, 8), 8)          # single (or few) tile(s)
    tm = max(128, min(512, _round_up(_cdiv(m, 8), 8)))
    steps = _cdiv(m, tm)
    if steps > 1 and steps % 2 == 1:
        # Best effort: even number of grid steps so both v7x TensorCores get
        # equal work (harmless on v5e/v6e).
        tm2 = _round_up(_cdiv(m, steps + 1), 8)
        if tm2 >= 128:
            tm = tm2
    return tm


def _choose_tn(d: int) -> int:
    """Output-column tile.  Fully-resident W for typical ViT hidden dims;
    N-tiling only when the resident bf16 W would pressure v7x's 64 MiB VMEM."""
    if d % 128 != 0 or d <= 2048:
        return d
    for tn in (1024, 512, 256, 128):
        if d % tn == 0:
            return tn
    return d


def _residual_linear_kernel(x_ref, w_ref, b_ref, o_ref, *, tn, n_tiled):
    """out[:, jTN:(j+1)TN] = x @ W[:, jTN:(j+1)TN] + b[jTN:(j+1)TN] + x[:, jTN:(j+1)TN]

    x_ref: (TM, D)  input row tile (resident across the inner N axis)
    w_ref: (D, TN)  bf16 weight column tile
    b_ref: (1, TN)  f32 bias column tile
    o_ref: (TM, TN) output tile
    """
    x = x_ref[...]
    # bf16 operands into the MXU, f32 accumulation.
    y = jnp.dot(x.astype(jnp.bfloat16), w_ref[...],
                preferred_element_type=jnp.float32)
    if n_tiled:
        j = pl.program_id(1)
        start = pl.multiple_of(j * tn, tn)
        x_res = x_ref[:, pl.ds(start, tn)]
    else:
        x_res = x
    # Bias + residual add stay exact in f32 on the VPU.
    o_ref[...] = (y + b_ref[...] + x_res.astype(jnp.float32)).astype(o_ref.dtype)


@functools.partial(jax.jit, static_argnames=("tn_override",))
def residual_adding_linear(x, w_bf16, b2, tn_override=None):
    """Fused residualAdding(Linear(D, D)):  out = x @ W + b + x.

    x:      (..., D) float32 or bfloat16
    w_bf16: (D, D)   bfloat16, laid out so y = x @ w  (i.e. torch W^T)
    b2:     (1, D)   float32
    """
    *lead, D = x.shape
    M = 1
    for s in lead:
        M *= s
    x2 = x.reshape(M, D)            # merge leading dims (bitcast under jit)

    TM = _choose_tm(M)
    TN = tn_override if tn_override is not None else _choose_tn(D)
    assert D % TN == 0, (D, TN)
    num_m = _cdiv(M, TM)            # ragged last block handled by Pallas
    num_n = D // TN
    n_tiled = num_n > 1
    grid = (num_m, num_n)           # N is the inner axis -> x tile resident per row block

    itemsize = jnp.dtype(x.dtype).itemsize
    # Working set: double-buffered x row tile + out tile, W/bias column tiles.
    vmem_bytes = (2 * TM * D * itemsize        # x tile
                  + 2 * D * TN * 2             # W tile (bf16)
                  + 2 * TN * 4                 # bias tile
                  + 2 * TM * TN * itemsize)    # out tile
    vmem_limit = max(16 << 20, min(int(vmem_bytes * 1.25) + (2 << 20), 64 << 20))

    cost = pl.CostEstimate(
        flops=2 * M * D * D,
        transcendentals=0,
        bytes_accessed=(M * D * itemsize      # x read
                        + D * D * 2           # W read (bf16)
                        + D * 4               # bias read
                        + M * D * itemsize),  # out write
    )

    kernel = functools.partial(_residual_linear_kernel, tn=TN, n_tiled=n_tiled)

    out2 = pl.pallas_call(
        kernel,
        out_shape=jax.ShapeDtypeStruct((M, D), x.dtype),
        grid=grid,
        in_specs=[
            pl.BlockSpec((TM, D), lambda i, j: (i, 0)),    # x rows (full width)
            pl.BlockSpec((D, TN), lambda i, j: (0, j)),    # W column tile / resident
            pl.BlockSpec((1, TN), lambda i, j: (0, j)),    # bias column tile
        ],
        out_specs=pl.BlockSpec((TM, TN), lambda i, j: (i, j)),
        compiler_params=pltpu.CompilerParams(
            dimension_semantics=("parallel", "parallel"),  # shard across TCs on v7x
            vmem_limit_bytes=vmem_limit,
        ),
        cost_estimate=cost,
    )(x2, w_bf16, b2)

    return out2.reshape(x.shape)


class ResidualAdding:
    """Mirror of the PyTorch residualAdding wrapper (func fixed to the fused
    Pallas Linear for this synthetic test).  Weight prep happens once here."""

    def __init__(self, w, b):
        # w laid out so that y = x @ w (i.e. already W^T of torch's Linear).
        self.w_bf16 = jnp.asarray(w).astype(jnp.bfloat16)
        self.b2 = jnp.asarray(b).astype(jnp.float32).reshape(1, -1)

    def __call__(self, x, **kwargs):
        # out = func(x) + x, computed fused in the Pallas kernel.
        return residual_adding_linear(x, self.w_bf16, self.b2)


if __name__ == "__main__":
    # ---- Test 1: small ViT-ish shapes (single tile, D not a multiple of 128).
    key = jax.random.PRNGKey(0)
    kx, kw, kb = jax.random.split(key, 3)
    B, S, D = 2, 8, 32
    x = jax.random.normal(kx, (B, S, D), dtype=jnp.float32)
    w = jax.random.normal(kw, (D, D), dtype=jnp.float32) * 0.02
    b = jax.random.normal(kb, (D,), dtype=jnp.float32) * 0.02

    module = ResidualAdding(w, b)
    out = jax.block_until_ready(module(x))

    ref = (jnp.einsum("bsd,de->bse", x, w) + b) + x
    assert out.shape == x.shape and out.dtype == x.dtype
    assert jnp.allclose(out, ref, atol=2e-2, rtol=2e-2), (
        float(jnp.max(jnp.abs(out - ref))))

    # ---- Test 2: multi-tile path — ragged last row block, 2x2 grid, forced
    # N-tiling (validates the pipelined / megacore / column-tiled code path).
    k2x, k2w, k2b = jax.random.split(jax.random.PRNGKey(1), 3)
    B2, S2, D2 = 3, 50, 256                    # M = 150 -> TM = 128, ragged tail
    x_big = jax.random.normal(k2x, (B2, S2, D2), dtype=jnp.float32)
    w_big = jax.random.normal(k2w, (D2, D2), dtype=jnp.float32) * 0.02
    b_big = jax.random.normal(k2b, (D2,), dtype=jnp.float32) * 0.02
    out_big = jax.block_until_ready(
        residual_adding_linear(x_big, w_big.astype(jnp.bfloat16),
                               b_big.reshape(1, -1).astype(jnp.float32),
                               tn_override=128))
    w_ref = w_big.astype(jnp.bfloat16).astype(jnp.float32)
    ref_big = (jnp.einsum("bsd,de->bse", x_big, w_ref) + b_big) + x_big
    assert out_big.shape == x_big.shape and out_big.dtype == x_big.dtype
    assert jnp.allclose(out_big, ref_big, atol=3e-2, rtol=3e-2), (
        float(jnp.max(jnp.abs(out_big - ref_big))))

    print("KERNEL_OK")
</pallas_src>

<mosaic_0001>
module attributes {stable_mosaic.version = 11 : i64} {
  func.func @_residual_linear_kernel(%arg0: i32, %arg1: i32, %arg2: memref<16x32xf32, #tpu.memory_space<vmem>>, %arg3: memref<32x32xbf16, #tpu.memory_space<vmem>>, %arg4: memref<1x32xf32, #tpu.memory_space<vmem>>, %arg5: memref<16x32xf32, #tpu.memory_space<vmem>>) attributes {dimension_semantics = [#tpu.dimension_semantics<parallel>, #tpu.dimension_semantics<parallel>], iteration_bounds = array<i64: 1, 1>, scalar_prefetch = 0 : i64, scratch_operands = 0 : i64, tpu.core_type = #tpu.core_type<tc>, window_params = [{transform_indices = @transform_0, window_bounds = array<i64: 16, 32>}, {transform_indices = @transform_1, window_bounds = array<i64: 32, 32>}, {transform_indices = @transform_2, window_bounds = array<i64: 1, 32>}, {transform_indices = @transform_3, window_bounds = array<i64: 16, 32>}]} {
    %c0 = arith.constant 0 : index
    %c0_0 = arith.constant 0 : index
    %0 = vector.load %arg2[%c0, %c0_0] : memref<16x32xf32, #tpu.memory_space<vmem>>, vector<16x32xf32>
    %1 = arith.truncf %0 : vector<16x32xf32> to vector<16x32xbf16>
    %c0_1 = arith.constant 0 : index
    %c0_2 = arith.constant 0 : index
    %2 = vector.load %arg3[%c0_1, %c0_2] : memref<32x32xbf16, #tpu.memory_space<vmem>>, vector<32x32xbf16>
    %cst = arith.constant dense<0.000000e+00> : vector<16x32xf32>
    %3 = tpu.matmul %1, %2, %cst {dimension_numbers = #tpu.dot_dimension_numbers<[1], [0], [0], [1], [0, 0, 1, 1], [], []>} : vector<16x32xbf16>, vector<32x32xbf16>, vector<16x32xf32> -> vector<16x32xf32>
    %c0_3 = arith.constant 0 : index
    %c0_4 = arith.constant 0 : index
    %4 = vector.load %arg4[%c0_3, %c0_4] : memref<1x32xf32, #tpu.memory_space<vmem>>, vector<1x32xf32>
    %5 = vector.broadcast %4 : vector<1x32xf32> to vector<16x32xf32>
    %6 = arith.addf %3, %5 : vector<16x32xf32>
    %7 = arith.addf %6, %0 : vector<16x32xf32>
    %c0_5 = arith.constant 0 : index
    %c0_6 = arith.constant 0 : index
    %8 = vector.load %arg5[%c0_5, %c0_6] : memref<16x32xf32, #tpu.memory_space<vmem>>, vector<16x32xf32>
    tpu.vector_store %arg5[%c0_5, %c0_6], %7 {strides = array<i32>} : memref<16x32xf32, #tpu.memory_space<vmem>>, vector<16x32xf32>,
    return
  }
  func.func @transform_0(%arg0: i32, %arg1: i32) -> (i32, i32) {
    %c0_i32 = arith.constant 0 : i32
    %c0_i32_0 = arith.constant 0 : i32
    return %arg0, %c0_i32 : i32, i32
  }
  func.func @transform_1(%arg0: i32, %arg1: i32) -> (i32, i32) {
    %c0_i32 = arith.constant 0 : i32
    %c0_i32_0 = arith.constant 0 : i32
    return %c0_i32, %arg1 : i32, i32
  }
  func.func @transform_2(%arg0: i32, %arg1: i32) -> (i32, i32) {
    %c0_i32 = arith.constant 0 : i32
    %c0_i32_0 = arith.constant 0 : i32
    return %c0_i32, %arg1 : i32, i32
  }
  func.func @transform_3(%arg0: i32, %arg1: i32) -> (i32, i32) {
    %c0_i32 = arith.constant 0 : i32
    return %arg0, %arg1 : i32, i32
  }
}

</mosaic_0001>

<bundles_post_ra>
// kernel: residual_adding_linear.1
= control target key start
LH: loop header
LB: loop body
LE: loop exit
PB: predicated region body
PF: predicated region fallthrough
CT: control target
= control target key end

     0   :  { %8 = vsyncpa [#allocation3], 0  ;;  %s309_s0 = inlined_call_operand.hbm [shape: f32[16,32], index: 0, kind: input, shape index: {}]   ;;  %s310_s1 = inlined_call_operand.hbm [shape: bf16[32,32], index: 1, kind: input, shape index: {}]   ;;  %s311_s2 = inlined_call_operand.vmem [shape: f32[1,32], index: 2, kind: input, shape index: {}]   ;;  %s312_s3 = inlined_call_operand.hbm [shape: f32[16,32], index: 3, kind: output, shape index: {}]  }
   0x1   :  { %9 = vsyncpa [#allocation6], 0 }
   0x2   :  { %10 = vsyncpa [#allocation4], 0  ;;  %s235_s12 = smov [#allocation2]   ;;  %s163_s16 = scalar_lea.hbm %s309_s0, 256 }
   0x3   :  { %s16_s13 = sshll.u32 %s235_s12, 4  ;;  %p164_p0 = scmp.ne.s32.totalorder %s309_s0, %s163_s16  ;;  %s17_s13 = int_to_ptr.vmem [resolvable:$true] %s16_s13 }
   0x4   :  { %p167_p1 = scmp.lt.u32.totalorder %s163_s16, %s309_s0 }
   0x6   :  { %p169_p2 = pnand %p167_p1, %p164_p0 }
   0x8   :  { %172 = shalt.err (!%p169_p2)
}
   0x9   :  { %s173_s21 = scalar_lea.vmem %s17_s13, 256  ;;  %p178_p4 = scmp.lt.s32.totalorder %s17_s13, %s17_s13 }
   0xa   :  { %p174_p3 = scmp.ne.s32.totalorder %s17_s13, %s173_s21  ;;  %p179_p5 = scmp.lt.s32.totalorder %s173_s21, %s173_s21 }
   0xc   :  { %p180_p6 = por %p179_p5, %p178_p4 }
   0xe   :  { %p181_p7 = pnand %p180_p6, %p174_p3 }
  0x10   :  { %184 = shalt.err (!%p181_p7)
}
  0x11   :  { %s236_s22 = smov 128   ;;  %s237_s23 = smov 8  }
  0x12   :  { %22 = dma.hbm_to_vmem [thread:$0]  %s309_s0, 256, %s17_s13, [#allocation3], %s236_s22, %s236_s22, %s237_s23  }
  0x13   :  { %s238_s26 = smov [#allocation5]   ;;  %s185_s30 = scalar_lea.hbm %s310_s1, 256 }
  0x14   :  { %s28_s27 = sshll.u32 %s238_s26, 4  ;;  %p186_p8 = scmp.ne.s32.totalorder %s310_s1, %s185_s30  ;;  %s29_s27 = int_to_ptr.vmem [resolvable:$true] %s28_s27 }
  0x15   :  { %p189_p9 = scmp.lt.u32.totalorder %s185_s30, %s310_s1 }
  0x17   :  { %p191_p10 = pnand %p189_p9, %p186_p8 }
  0x19   :  { %194 = shalt.err (!%p191_p10)
}
  0x1a   :  { %s195_s8 = scalar_lea.vmem %s29_s27, 256  ;;  %p200_p12 = scmp.lt.s32.totalorder %s29_s27, %s29_s27 }
  0x1b   :  { %p196_p11 = scmp.ne.s32.totalorder %s29_s27, %s195_s8  ;;  %p201_p13 = scmp.lt.s32.totalorder %s195_s8, %s195_s8 }
  0x1d   :  { %p202_p0 = por %p201_p13, %p200_p12 }
  0x1f   :  { %p203_p1 = pnand %p202_p0, %p196_p11 }
  0x21   :  { %206 = shalt.err (!%p203_p1)
}
  0x22   :  { %s239_s0 = smov 64   ;;  %s240_s9 = smov 4  }
  0x23   :  { %34 = dma.hbm_to_vmem [thread:$0]  %s310_s1, 256, %s29_s27, [#allocation6], %s239_s0, %s239_s0, %s240_s9  }
  0x24   :  { %229 = dma.done.wait [#allocation3], 256  }
  0x25   :  { %230 = vsyncadd [#allocation3], 4294967040 }
  0x26   :  { %231 = dma.done.wait [#allocation6], 256  }
  0x27   :  { %232 = vsyncadd [#allocation6], 4294967040  ;;  %v241_v0 = vmov 0.0   ;;  %vm242_vm0 = vmmov 0   ;;  %v161_v1 = vld [vmem:[#allocation5] sm:$0xff]   ;;  %v162_v2 = vld [vmem:[#allocation5 + $0x8] sm:$0xff]  }
  0x28   :  { %144 = vmatprep.subr.bf16.mxu0 %v241_v0  ;;  %148 = vmatprep.mubr.msk.bf16.mxu0 %vm242_vm0, %v241_v0  ;;  %v44_v3 = vld [vmem:[#allocation2] sm:$0xff]  ;;  %v45_v4 = vld [vmem:[#allocation2 + $0x8] sm:$0xff]  ;;  %vm70_vm1 = vcmask 261120   ;;  %s243_s13 = smov [#allocation7]  }
  0x29   :  { %145 = vmatpush3.bf16.msra.mxu0 %v161_v1  ;;  %v46_v5 = vpack.c.bf16 %v45_v4, %v44_v3  ;;  %v137_v6 = vld [vmem:[%s311_s2] ss:$0 sm:$0xff]  ;;  %s124_s14 = sshll.u32 %s243_s13, 4  ;;  %s125_s14 = int_to_ptr.vmem [resolvable:$true] %s124_s14 }
  0x2a   :  { %146 = vmatprep.subr.bf16.mxu0 %v241_v0  ;;  %s207_s15 = scalar_lea.vmem %s125_s14, 256  ;;  %p212_p3 = scmp.lt.s32.totalorder %s125_s14, %s125_s14 }
  0x2b   :  { %p208_p2 = scmp.ne.s32.totalorder %s125_s14, %s207_s15  ;;  %p213_p4 = scmp.lt.s32.totalorder %s207_s15, %s207_s15 }
  0x2d   :  { %147 = vmatpush3.bf16.msra.mxu0 %v162_v2  ;;  %p214_p5 = por %p213_p4, %p212_p3 }
  0x2f   :  { %p215_p6 = pnand %p214_p5, %p208_p2 }
  0x30   :  { %149 = vmatmul.mubr.msk.bf16.vlgmr.msra.gmra.mrb[0].mxu0 %vm70_vm1, %v46_v5 }
 0x103   :  { %v108_v7 = vpop.f32.mrb[0].mxu0 }
 0x104   :  { %v109_v8 = vadd.f32 %v137_v6, %v108_v7  ;;  %v150_v9 = vpop.f32.mrb[1].mxu0 }
 0x105   :  { %v111_v10 = vpop.f32.mrb[2].mxu0 }
 0x106   :  { %v115_v11 = vadd.f32 %v109_v8, %v44_v3  ;;  %v112_v12 = vadd.f32 %v137_v6, %v111_v10  ;;  %v151_v13 = vpop.f32.mrb[3].mxu0 }
 0x108   :  { %117 = vst.msk [vmem:[#allocation7] sm:$0xff] %vm70_vm1, %v115_v11  ;;  %v116_v14 = vadd.f32 %v112_v12, %v45_v4 }
 0x10a   :  { %118 = vst.msk [vmem:[#allocation7 + $0x8] sm:$0xff] %vm70_vm1, %v116_v14 }
 0x10b   :  { %218 = shalt.err (!%p215_p6)
}
 0x10c   :  { %s219_s17 = scalar_lea.hbm %s312_s3, 256 }
 0x10d   :  { %p220_p7 = scmp.ne.s32.totalorder %s312_s3, %s219_s17  ;;  %p223_p8 = scmp.lt.u32.totalorder %s219_s17, %s312_s3 }
 0x10f   :  { %p225_p9 = pnand %p223_p8, %p220_p7 }
 0x111   :  { %228 = shalt.err (!%p225_p9)
}
 0x112   :  { %130 = dma.vmem_to_hbm [thread:$0]  %s125_s14, 256, %s312_s3, [#allocation4], %s236_s22, %s236_s22, %s237_s23  }
 0x113   :  { %233 = dma.done.wait [#allocation4], 256  }
 0x114   :  { %234 = vsyncadd [#allocation4], 4294967040 }
 0x115   :  { %134 = vsyncpa [#allocation3], 1 }
 0x116   :  { %135 = vsyncpa [#allocation6], 1 }
 0x117   :  { %136 = vsyncpa [#allocation4], 1 }

</bundles_post_ra>
